<compile_context>
chip_gen: v6e
topology: v6e:2x2x1
jax: 0.10.0
libtpu: 0.0.40
codegen_flags: <defaults>
</compile_context>

<pallas_src>
import functools
import math

import jax
import jax.numpy as jnp
from jax.experimental import pallas as pl
from jax.experimental.pallas import tpu as pltpu

LOG_STD_MAX = 2.0
LOG_STD_MIN = -5.0

HIDDEN = 256


def _round_up(x, m):
    return ((x + m - 1) // m) * m


def actor_kernel(x_ref, w1_ref, b1_ref, w2_ref, b2_ref, wh_ref, bh_ref,
                 out_ref, *, head_half):
    """One batch tile: two MLP layers + fused (mean | log_std) head.

    wh_ref is the packed head weight (HIDDEN, 2*head_half): mean weights in
    columns [0, A), log_std weights in columns [head_half, head_half+A); the
    rest is zero padding so the output slab is lane-dense.
    """
    cdt = w1_ref.dtype  # matmul operand dtype (f32, or bf16 when use_bf16=True)

    x = x_ref[...]

    # fc1 + relu  (accumulate in f32, epilogue in f32)
    h1 = jnp.dot(x, w1_ref[...], preferred_element_type=jnp.float32) + b1_ref[...]
    h1 = jnp.maximum(h1, 0.0)

    # fc2 + relu
    h2 = jnp.dot(h1.astype(cdt), w2_ref[...],
                 preferred_element_type=jnp.float32) + b2_ref[...]
    h2 = jnp.maximum(h2, 0.0)

    # fused heads: one matmul produces [mean | log_std_raw] side by side
    head = jnp.dot(h2.astype(cdt), wh_ref[...],
                   preferred_element_type=jnp.float32) + bh_ref[...]

    # log_std branch: tanh squash then affine rescale into [LOG_STD_MIN, LOG_STD_MAX]
    ls = jnp.tanh(head)
    ls = LOG_STD_MIN + 0.5 * (LOG_STD_MAX - LOG_STD_MIN) * (ls + 1.0)

    # column select: left half of the slab is the mean head (identity epilogue),
    # right half is the log_std head (tanh+affine epilogue).
    col = jax.lax.broadcasted_iota(jnp.int32, head.shape, 1)
    out_ref[...] = jnp.where(col < head_half, head, ls)


def actor_forward(x, params, act_dim, *, block_b=None, use_bf16=False):
    """x: (B, obs_dim) float32 -> (mean (B, A), log_std (B, A))."""
    B, obs_dim = x.shape
    A = act_dim
    assert params["wm"].shape == (HIDDEN, A)

    # Packed, lane-dense head: width is a multiple of 128 (>= 128).
    head_half = max(64, _round_up(A, 64))
    head_width = 2 * head_half

    wh = jnp.zeros((HIDDEN, head_width), jnp.float32)
    wh = wh.at[:, :A].set(params["wm"])
    wh = wh.at[:, head_half:head_half + A].set(params["ws"])
    bh = jnp.zeros((1, head_width), jnp.float32)
    bh = bh.at[:, :A].set(params["bm"][0])
    bh = bh.at[:, head_half:head_half + A].set(params["bs"][0])

    # Optional bf16 fast path for matmul operands (v6e/v7x); biases / epilogue
    # stay f32 (also the right thing on v5e, which has no bf16 VPU/EUP).
    cdt = jnp.bfloat16 if use_bf16 else jnp.float32
    xc = x.astype(cdt)
    w1c = params["w1"].astype(cdt)
    w2c = params["w2"].astype(cdt)
    whc = wh.astype(cdt)
    b1, b2 = params["b1"], params["b2"]

    # Batch tile: multiple of 8 sublanes, capped so the per-step VMEM footprint
    # (activations + double-buffered x/out blocks + resident weights) stays well
    # under v7x's 32 MiB scoped-VMEM default.
    TB = block_b if block_b is not None else min(512, _round_up(B, 8))
    TB = _round_up(TB, 8)
    B_pad = _round_up(B, TB)
    if B_pad != B:
        xc = jnp.pad(xc, ((0, B_pad - B), (0, 0)))

    grid = (B_pad // TB,)
    const = lambda i: (0, 0)  # weights/biases: same block every step -> VMEM resident

    out = pl.pallas_call(
        functools.partial(actor_kernel, head_half=head_half),
        out_shape=jax.ShapeDtypeStruct((B_pad, head_width), jnp.float32),
        grid=grid,
        in_specs=[
            pl.BlockSpec((TB, obs_dim), lambda i: (i, 0)),     # x: tiled over batch
            pl.BlockSpec((obs_dim, HIDDEN), const),            # W1
            pl.BlockSpec((1, HIDDEN), const),                  # b1
            pl.BlockSpec((HIDDEN, HIDDEN), const),             # W2
            pl.BlockSpec((1, HIDDEN), const),                  # b2
            pl.BlockSpec((HIDDEN, head_width), const),         # packed head W
            pl.BlockSpec((1, head_width), const),              # packed head b
        ],
        out_specs=pl.BlockSpec((TB, head_width), lambda i: (i, 0)),
        compiler_params=pltpu.CompilerParams(
            dimension_semantics=("parallel",)),
    )(xc, w1c, b1, w2c, b2, whc, bh)

    mean = out[:B, :A]
    log_std = out[:B, head_half:head_half + A]
    return mean, log_std


def init_linear(key, fan_in, fan_out):
    """torch.nn.Linear default init: U(-1/sqrt(fan_in), 1/sqrt(fan_in))."""
    bound = 1.0 / math.sqrt(fan_in)
    kw, kb = jax.random.split(key)
    w = jax.random.uniform(kw, (fan_in, fan_out), jnp.float32, -bound, bound)
    b = jax.random.uniform(kb, (1, fan_out), jnp.float32, -bound, bound)
    return w, b


def make_params(key, obs_dim, act_dim):
    k1, k2, k3, k4 = jax.random.split(key, 4)
    w1, b1 = init_linear(k1, obs_dim, HIDDEN)
    w2, b2 = init_linear(k2, HIDDEN, HIDDEN)
    wm, bm = init_linear(k3, HIDDEN, act_dim)
    ws, bs = init_linear(k4, HIDDEN, act_dim)
    return dict(w1=w1, b1=b1, w2=w2, b2=b2, wm=wm, bm=bm, ws=ws, bs=bs)


def actor_forward_ref(x, p):
    h1 = jnp.maximum(x @ p["w1"] + p["b1"], 0.0)
    h2 = jnp.maximum(h1 @ p["w2"] + p["b2"], 0.0)
    mean = h2 @ p["wm"] + p["bm"]
    ls = jnp.tanh(h2 @ p["ws"] + p["bs"])
    ls = LOG_STD_MIN + 0.5 * (LOG_STD_MAX - LOG_STD_MIN) * (ls + 1.0)
    return mean, ls


# TODO(synk): get_action (reparameterized Normal sampling + tanh-squashed
# log-prob, action_scale/bias) is host-side RNG/distribution logic; only the
# deterministic forward() is kernelized here.

if __name__ == "__main__":
    key = jax.random.PRNGKey(0)
    k_params, k_x = jax.random.split(key)

    batch = 8
    obs_dim = 16   # env.single_observation_space.shape -> flattened obs
    act_dim = 4    # env.single_action_space.shape

    params = make_params(k_params, obs_dim, act_dim)
    x = jax.random.normal(k_x, (batch, obs_dim), jnp.float32)

    mean, log_std = actor_forward(x, params, act_dim)
    jax.block_until_ready((mean, log_std))

    # sanity check against a pure-JAX reference
    mean_ref, log_std_ref = actor_forward_ref(x, params)
    assert mean.shape == (batch, act_dim) and log_std.shape == (batch, act_dim)
    assert jnp.allclose(mean, mean_ref, atol=1e-5, rtol=1e-5)
    assert jnp.allclose(log_std, log_std_ref, atol=1e-5, rtol=1e-5)

    print("KERNEL_OK")
</pallas_src>

<mosaic_0001>
module attributes {stable_mosaic.version = 11 : i64} {
  func.func @actor_kernel(%arg0: i32, %arg1: memref<8x16xf32, #tpu.memory_space<vmem>>, %arg2: memref<16x256xf32, #tpu.memory_space<vmem>>, %arg3: memref<1x256xf32, #tpu.memory_space<vmem>>, %arg4: memref<256x256xf32, #tpu.memory_space<vmem>>, %arg5: memref<1x256xf32, #tpu.memory_space<vmem>>, %arg6: memref<256x128xf32, #tpu.memory_space<vmem>>, %arg7: memref<1x128xf32, #tpu.memory_space<vmem>>, %arg8: memref<8x128xf32, #tpu.memory_space<vmem>>) attributes {dimension_semantics = [#tpu.dimension_semantics<parallel>], iteration_bounds = array<i64: 1>, scalar_prefetch = 0 : i64, scratch_operands = 0 : i64, tpu.core_type = #tpu.core_type<tc>, window_params = [{transform_indices = @transform_0, window_bounds = array<i64: 8, 16>}, {pipeline_mode = #tpu.pipeline_mode<synchronous>, transform_indices = @transform_1, window_bounds = array<i64: 16, 256>}, {pipeline_mode = #tpu.pipeline_mode<synchronous>, transform_indices = @transform_2, window_bounds = array<i64: 1, 256>}, {pipeline_mode = #tpu.pipeline_mode<synchronous>, transform_indices = @transform_3, window_bounds = array<i64: 256, 256>}, {pipeline_mode = #tpu.pipeline_mode<synchronous>, transform_indices = @transform_4, window_bounds = array<i64: 1, 256>}, {pipeline_mode = #tpu.pipeline_mode<synchronous>, transform_indices = @transform_5, window_bounds = array<i64: 256, 128>}, {pipeline_mode = #tpu.pipeline_mode<synchronous>, transform_indices = @transform_6, window_bounds = array<i64: 1, 128>}, {transform_indices = @transform_7, window_bounds = array<i64: 8, 128>}]} {
    %c0 = arith.constant 0 : index
    %c0_0 = arith.constant 0 : index
    %0 = vector.load %arg1[%c0, %c0_0] : memref<8x16xf32, #tpu.memory_space<vmem>>, vector<8x16xf32>
    %c0_1 = arith.constant 0 : index
    %c0_2 = arith.constant 0 : index
    %1 = vector.load %arg2[%c0_1, %c0_2] : memref<16x256xf32, #tpu.memory_space<vmem>>, vector<16x256xf32>
    %cst = arith.constant dense<0.000000e+00> : vector<8x256xf32>
    %2 = tpu.matmul %0, %1, %cst {dimension_numbers = #tpu.dot_dimension_numbers<[1], [0], [0], [1], [0, 0, 1, 1], [], []>} : vector<8x16xf32>, vector<16x256xf32>, vector<8x256xf32> -> vector<8x256xf32>
    %c0_3 = arith.constant 0 : index
    %c0_4 = arith.constant 0 : index
    %3 = vector.load %arg3[%c0_3, %c0_4] : memref<1x256xf32, #tpu.memory_space<vmem>>, vector<1x256xf32>
    %4 = vector.broadcast %3 : vector<1x256xf32> to vector<8x256xf32>
    %5 = arith.addf %2, %4 : vector<8x256xf32>
    %cst_5 = arith.constant 0.000000e+00 : f32
    %6 = vector.broadcast %cst_5 : f32 to vector<8x256xf32>
    %7 = arith.maximumf %5, %6 : vector<8x256xf32>
    %c0_6 = arith.constant 0 : index
    %c0_7 = arith.constant 0 : index
    %8 = vector.load %arg4[%c0_6, %c0_7] : memref<256x256xf32, #tpu.memory_space<vmem>>, vector<256x256xf32>
    %cst_8 = arith.constant dense<0.000000e+00> : vector<8x256xf32>
    %9 = tpu.matmul %7, %8, %cst_8 {dimension_numbers = #tpu.dot_dimension_numbers<[1], [0], [0], [1], [0, 0, 1, 1], [], []>} : vector<8x256xf32>, vector<256x256xf32>, vector<8x256xf32> -> vector<8x256xf32>
    %c0_9 = arith.constant 0 : index
    %c0_10 = arith.constant 0 : index
    %10 = vector.load %arg5[%c0_9, %c0_10] : memref<1x256xf32, #tpu.memory_space<vmem>>, vector<1x256xf32>
    %11 = vector.broadcast %10 : vector<1x256xf32> to vector<8x256xf32>
    %12 = arith.addf %9, %11 : vector<8x256xf32>
    %cst_11 = arith.constant 0.000000e+00 : f32
    %13 = vector.broadcast %cst_11 : f32 to vector<8x256xf32>
    %14 = arith.maximumf %12, %13 : vector<8x256xf32>
    %c0_12 = arith.constant 0 : index
    %c0_13 = arith.constant 0 : index
    %15 = vector.load %arg6[%c0_12, %c0_13] : memref<256x128xf32, #tpu.memory_space<vmem>>, vector<256x128xf32>
    %cst_14 = arith.constant dense<0.000000e+00> : vector<8x128xf32>
    %16 = tpu.matmul %14, %15, %cst_14 {dimension_numbers = #tpu.dot_dimension_numbers<[1], [0], [0], [1], [0, 0, 1, 1], [], []>} : vector<8x256xf32>, vector<256x128xf32>, vector<8x128xf32> -> vector<8x128xf32>
    %c0_15 = arith.constant 0 : index
    %c0_16 = arith.constant 0 : index
    %17 = vector.load %arg7[%c0_15, %c0_16] : memref<1x128xf32, #tpu.memory_space<vmem>>, vector<1x128xf32>
    %18 = vector.broadcast %17 : vector<1x128xf32> to vector<8x128xf32>
    %19 = arith.addf %16, %18 : vector<8x128xf32>
    %20 = math.tanh %19 : vector<8x128xf32>
    %cst_17 = arith.constant 1.000000e+00 : f32
    %21 = vector.broadcast %cst_17 : f32 to vector<8x128xf32>
    %22 = arith.addf %20, %21 : vector<8x128xf32>
    %cst_18 = arith.constant 3.500000e+00 : f32
    %23 = vector.broadcast %cst_18 : f32 to vector<8x128xf32>
    %24 = arith.mulf %23, %22 : vector<8x128xf32>
    %cst_19 = arith.constant -5.000000e+00 : f32
    %25 = vector.broadcast %cst_19 : f32 to vector<8x128xf32>
    %26 = arith.addf %25, %24 : vector<8x128xf32>
    %27 = tpu.iota {dimensions = array<i32: 1>} : vector<8x128xi32>
    %c64_i32 = arith.constant 64 : i32
    %28 = vector.broadcast %c64_i32 : i32 to vector<8x128xi32>
    %29 = arith.cmpi slt, %27, %28 : vector<8x128xi32>
    %30 = arith.select %29, %19, %26 : vector<8x128xi1>, vector<8x128xf32>
    %c0_20 = arith.constant 0 : index
    %c0_21 = arith.constant 0 : index
    %31 = vector.load %arg8[%c0_20, %c0_21] : memref<8x128xf32, #tpu.memory_space<vmem>>, vector<8x128xf32>
    tpu.vector_store %arg8[%c0_20, %c0_21], %30 {strides = array<i32>} : memref<8x128xf32, #tpu.memory_space<vmem>>, vector<8x128xf32>,
    return
  }
  func.func @transform_0(%arg0: i32) -> (i32, i32) {
    %c0_i32 = arith.constant 0 : i32
    %c0_i32_0 = arith.constant 0 : i32
    return %arg0, %c0_i32 : i32, i32
  }
  func.func @transform_1(%arg0: i32) -> (i32, i32) {
    %c0_i32 = arith.constant 0 : i32
    %c0_i32_0 = arith.constant 0 : i32
    %c0_i32_1 = arith.constant 0 : i32
    return %c0_i32, %c0_i32_0 : i32, i32
  }
  func.func @transform_2(%arg0: i32) -> (i32, i32) {
    %c0_i32 = arith.constant 0 : i32
    %c0_i32_0 = arith.constant 0 : i32
    %c0_i32_1 = arith.constant 0 : i32
    return %c0_i32, %c0_i32_0 : i32, i32
  }
  func.func @transform_3(%arg0: i32) -> (i32, i32) {
    %c0_i32 = arith.constant 0 : i32
    %c0_i32_0 = arith.constant 0 : i32
    %c0_i32_1 = arith.constant 0 : i32
    return %c0_i32, %c0_i32_0 : i32, i32
  }
  func.func @transform_4(%arg0: i32) -> (i32, i32) {
    %c0_i32 = arith.constant 0 : i32
    %c0_i32_0 = arith.constant 0 : i32
    %c0_i32_1 = arith.constant 0 : i32
    return %c0_i32, %c0_i32_0 : i32, i32
  }
  func.func @transform_5(%arg0: i32) -> (i32, i32) {
    %c0_i32 = arith.constant 0 : i32
    %c0_i32_0 = arith.constant 0 : i32
    %c0_i32_1 = arith.constant 0 : i32
    return %c0_i32, %c0_i32_0 : i32, i32
  }
  func.func @transform_6(%arg0: i32) -> (i32, i32) {
    %c0_i32 = arith.constant 0 : i32
    %c0_i32_0 = arith.constant 0 : i32
    %c0_i32_1 = arith.constant 0 : i32
    return %c0_i32, %c0_i32_0 : i32, i32
  }
  func.func @transform_7(%arg0: i32) -> (i32, i32) {
    %c0_i32 = arith.constant 0 : i32
    %c0_i32_0 = arith.constant 0 : i32
    return %arg0, %c0_i32 : i32, i32
  }
}

</mosaic_0001>

<bundles_post_ra>
// kernel: tpu_custom_call.1
= control target key start
LH: loop header
LB: loop body
LE: loop exit
PB: predicated region body
PF: predicated region fallthrough
CT: control target
= control target key end

     0   :  { %12 = vsyncpa [#allocation3], 0  ;;  %s689_s0 = inlined_call_operand.hbm [shape: f32[8,16], index: 0, kind: input, shape index: {}]   ;;  %s690_s1 = inlined_call_operand.hbm [shape: f32[16,256], index: 1, kind: input, shape index: {}]   ;;  %s691_s2 = inlined_call_operand.vmem [shape: f32[1,256], index: 2, kind: input, shape index: {}]   ;;  %s692_s3 = inlined_call_operand.hbm [shape: f32[256,256], index: 3, kind: input, shape index: {}]   ;;  %s693_s4 = inlined_call_operand.vmem [shape: f32[1,256], index: 4, kind: input, shape index: {}]   ;;  %s694_s5 = inlined_call_operand.hbm [shape: f32[256,128], index: 5, kind: input, shape index: {}]   ;;  %s695_s6 = inlined_call_operand.vmem [shape: f32[1,128], index: 6, kind: input, shape index: {}]   ;;  %s696_s7 = inlined_call_operand.hbm [shape: f32[8,128], index: 7, kind: output, shape index: {}]  }
   0x1   :  { %13 = vsyncpa [#allocation6], 0 }
   0x2   :  { %14 = vsyncpa [#allocation9], 0 }
   0x3   :  { %15 = vsyncpa [#allocation4], 0  ;;  %s615_s24 = smov [#allocation5]  }
   0x4   :  { %s31_s25 = sshll.u32 %s615_s24, 4  ;;  %s32_s25 = int_to_ptr.vmem [resolvable:$true] %s31_s25 }
   0x5   :  { %s515_s26 = scalar_lea.vmem %s32_s25, 512  ;;  %p520_p1 = scmp.lt.s32.totalorder %s32_s25, %s32_s25 }
   0x6   :  { %p516_p0 = scmp.ne.s32.totalorder %s32_s25, %s515_s26  ;;  %p521_p2 = scmp.lt.s32.totalorder %s515_s26, %s515_s26 }
   0x8   :  { %p522_p3 = por %p521_p2, %p520_p1 }
   0xa   :  { %p523_p4 = pnand %p522_p3, %p516_p0 }
   0xc   :  { %526 = shalt.err (!%p523_p4)
}
   0xd   :  { %s616_s27 = smov 256   ;;  %s617_s28 = smov 16  }
   0xe   :  { %37 = dma.hbm_to_vmem [thread:$0]  %s690_s1, 512, %s32_s25, [#allocation6], %s616_s27, %s616_s27, %s617_s28  }
   0xf   :  { %s618_s8 = smov [#allocation2]   ;;  %s619_s10 = smov [#allocation7]  }
  0x10   :  { %s22_s9 = sshll.u32 %s618_s8, 4  ;;  %s45_s11 = sshll.u32 %s619_s10, 4  ;;  %s23_s9 = int_to_ptr.vmem [resolvable:$true] %s22_s9  ;;  %s46_s11 = int_to_ptr.vmem [resolvable:$true] %s45_s11 }
  0x11   :  { %s535_s12 = scalar_lea.vmem %s23_s9, 128  ;;  %p540_p6 = scmp.lt.s32.totalorder %s23_s9, %s23_s9 }
  0x12   :  { %p536_p5 = scmp.ne.s32.totalorder %s23_s9, %s535_s12  ;;  %p541_p7 = scmp.lt.s32.totalorder %s535_s12, %s535_s12 }
  0x14   :  { %p542_p8 = por %p541_p7, %p540_p6 }
  0x16   :  { %p543_p9 = pnand %p542_p8, %p536_p5 }
  0x18   :  { %546 = shalt.err (!%p543_p9)
}
  0x19   :  { %25 = dma.hbm_to_vmem [thread:$0]  %s689_s0, 128, %s23_s9, [#allocation3]  }
  0x1a   :  { %s555_s15 = scalar_lea.vmem %s46_s11, 8192  ;;  %p560_p11 = scmp.lt.s32.totalorder %s46_s11, %s46_s11 }
  0x1b   :  { %p556_p10 = scmp.ne.s32.totalorder %s46_s11, %s555_s15  ;;  %p561_p12 = scmp.lt.s32.totalorder %s555_s15, %s555_s15 }
  0x1d   :  { %p562_p13 = por %p561_p12, %p560_p11 }
  0x1f   :  { %p563_p0 = pnand %p562_p13, %p556_p10 }
  0x21   :  { %566 = shalt.err (!%p563_p0)
}
  0x22   :  { %51 = dma.hbm_to_vmem [thread:$0]  %s692_s3, 8192, %s46_s11, [#allocation6], %s616_s27, %s616_s27, %s617_s28  }
  0x23   :  { %s620_s17 = smov [#allocation8]  }
  0x24   :  { %s59_s18 = sshll.u32 %s620_s17, 4  ;;  %s60_s18 = int_to_ptr.vmem [resolvable:$true] %s59_s18 }
  0x25   :  { %s575_s19 = scalar_lea.vmem %s60_s18, 4096  ;;  %p580_p2 = scmp.lt.s32.totalorder %s60_s18, %s60_s18 }
  0x26   :  { %p576_p1 = scmp.ne.s32.totalorder %s60_s18, %s575_s19  ;;  %p581_p3 = scmp.lt.s32.totalorder %s575_s19, %s575_s19 }
  0x28   :  { %p582_p4 = por %p581_p3, %p580_p2 }
  0x2a   :  { %p583_p5 = pnand %p582_p4, %p576_p1 }
  0x2c   :  { %586 = shalt.err (!%p583_p5)
}
  0x2d   :  { %s621_s0 = smov 128   ;;  %s622_s20 = smov 8  }
  0x2e   :  { %65 = dma.hbm_to_vmem [thread:$0]  %s694_s5, 4096, %s60_s18, [#allocation9], %s621_s0, %s621_s0, %s622_s20  }
  0x2f   :  { %607 = dma.done.wait [#allocation3], 128  }
  0x30   :  { %608 = vsyncadd [#allocation3], 4294967168 }
  0x31   :  { %609 = dma.done.wait [#allocation6], 8704  }
  0x32   :  { %610 = vsyncadd [#allocation6], 4294958592 }
  0x33   :  { %611 = dma.done.wait [#allocation9], 4096  }
  0x34   :  { %612 = vsyncadd [#allocation9], 4294963200  ;;  %v623_v0 = vmov 0.0   ;;  %v84_v1 = vld [vmem:[#allocation5 + $0x18] sm:$0xff]  ;;  %v83_v2 = vld [vmem:[#allocation5 + $0x10] sm:$0xff]  ;;  %vm97_vm0 = vcmask 130048  }
  0x35   :  { %165 = vmatprep.mubr.f32.mxu0 %v623_v0  ;;  %v82_v3 = vld [vmem:[#allocation5 + $0x8] sm:$0xff]  ;;  %129 = vmatprep.subr.mxu0 %v84_v1  ;;  %v81_v4 = vld [vmem:[#allocation5] sm:$0xff]  ;;  %v80_v5 = vld [vmem:[#allocation2] sm:$0xff] }
  0x36   :  { %v205_v6 = vld [vmem:[#allocation7 + $0xf8] sm:$0xff]  ;;  %130 = vmatpush1.msra.mxu0 %v83_v2  ;;  %v204_v7 = vld [vmem:[#allocation7 + $0xf0] sm:$0xff]  ;;  %v203_v8 = vld [vmem:[#allocation7 + $0xe8] sm:$0xff] }
  0x37   :  { %250 = vmatprep.subr.mxu1 %v205_v6  ;;  %v202_v9 = vld [vmem:[#allocation7 + $0xe0] sm:$0xff]  ;;  %131 = vmatprep.subr.mxu0 %v82_v3  ;;  %v201_v10 = vld [vmem:[#allocation7 + $0xd8] sm:$0xff]  ;;  %v200_v11 = vld [vmem:[#allocation7 + $0xd0] sm:$0xff] }
  0x38   :  { %251 = vmatpush1.msra.mxu1 %v204_v7  ;;  %132 = vmatpush1.msra.mxu0 %v81_v4  ;;  %v199_v12 = vld [vmem:[#allocation7 + $0xc8] sm:$0xff]  ;;  %v198_v13 = vld [vmem:[#allocation7 + $0xc0] sm:$0xff]  ;;  %v197_v14 = vld [vmem:[#allocation7 + $0xb8] sm:$0xff] }
  0x39   :  { %252 = vmatprep.subr.mxu1 %v203_v8  ;;  %458 = vmatmul.mubr.msk.f32.vlgmr.msra.gmra.mxu0 %vm97_vm0, %v80_v5  ;;  %v196_v15 = vld [vmem:[#allocation7 + $0xb0] sm:$0xff]  ;;  %v195_v16 = vld [vmem:[#allocation7 + $0xa8] sm:$0xff]  ;;  %v194_v17 = vld [vmem:[#allocation7 + $0xa0] sm:$0xff] }
  0x3a   :  { %253 = vmatpush1.msra.mxu1 %v202_v9  ;;  %v193_v18 = vld [vmem:[#allocation7 + $0x98] sm:$0xff]  ;;  %v192_v19 = vld [vmem:[#allocation7 + $0x90] sm:$0xff]  ;;  %v191_v20 = vld [vmem:[#allocation7 + $0x88] sm:$0xff] }
  0x3b   :  { %254 = vmatprep.subr.mxu1 %v201_v10  ;;  %v190_v21 = vld [vmem:[#allocation7 + $0x80] sm:$0xff]  ;;  %v189_v22 = vld [vmem:[#allocation7 + $0x78] sm:$0xff]  ;;  %v188_v23 = vld [vmem:[#allocation7 + $0x70] sm:$0xff] }
  0x3c   :  { %255 = vmatpush1.msra.mxu1 %v200_v11  ;;  %v187_v24 = vld [vmem:[#allocation7 + $0x68] sm:$0xff]  ;;  %v186_v25 = vld [vmem:[#allocation7 + $0x60] sm:$0xff]  ;;  %v185_v26 = vld [vmem:[#allocation7 + $0x58] sm:$0xff] }
  0x3d   :  { %256 = vmatprep.subr.mxu1 %v199_v12  ;;  %v184_v27 = vld [vmem:[#allocation7 + $0x50] sm:$0xff]  ;;  %v183_v28 = vld [vmem:[#allocation7 + $0x48] sm:$0xff]  ;;  %v182_v29 = vld [vmem:[#allocation7 + $0x40] sm:$0xff] }
  0x3e   :  { %257 = vmatpush1.msra.mxu1 %v198_v13  ;;  %v181_v30 = vld [vmem:[#allocation7 + $0x38] sm:$0xff]  ;;  %v180_v31 = vld [vmem:[#allocation7 + $0x30] sm:$0xff]  ;;  %v179_v32 = vld [vmem:[#allocation7 + $0x28] sm:$0xff] }
  0x3f   :  { %258 = vmatprep.subr.mxu1 %v197_v14  ;;  %v178_v33 = vld [vmem:[#allocation7 + $0x20] sm:$0xff]  ;;  %v177_v34 = vld [vmem:[#allocation7 + $0x18] sm:$0xff]  ;;  %v176_v35 = vld [vmem:[#allocation7 + $0x10] sm:$0xff] }
  0x40   :  { %259 = vmatpush1.msra.mxu1 %v196_v15  ;;  %v175_v36 = vld [vmem:[#allocation7 + $0x8] sm:$0xff]  ;;  %v174_v37 = vld [vmem:[#allocation7] sm:$0xff]  ;;  %v237_v38 = vld [vmem:[#allocation7 + $0x1f8] sm:$0xff] }
  0x41   :  { %260 = vmatprep.subr.mxu1 %v195_v16  ;;  %v236_v39 = vld [vmem:[#allocation7 + $0x1f0] sm:$0xff]  ;;  %v235_v40 = vld [vmem:[#allocation7 + $0x1e8] sm:$0xff]  ;;  %v234_v41 = vld [vmem:[#allocation7 + $0x1e0] sm:$0xff] }
  0x42   :  { %261 = vmatpush1.msra.mxu1 %v194_v17  ;;  %v233_v42 = vld [vmem:[#allocation7 + $0x1d8] sm:$0xff]  ;;  %v232_v43 = vld [vmem:[#allocation7 + $0x1d0] sm:$0xff]  ;;  %v231_v44 = vld [vmem:[#allocation7 + $0x1c8] sm:$0xff] }
  0x43   :  { %262 = vmatprep.subr.mxu1 %v193_v18  ;;  %v230_v45 = vld [vmem:[#allocation7 + $0x1c0] sm:$0xff]  ;;  %v229_v46 = vld [vmem:[#allocation7 + $0x1b8] sm:$0xff]  ;;  %v228_v47 = vld [vmem:[#allocation7 + $0x1b0] sm:$0xff] }
  0x44   :  { %263 = vmatpush1.msra.mxu1 %v192_v19  ;;  %v227_v48 = vld [vmem:[#allocation7 + $0x1a8] sm:$0xff]  ;;  %v226_v49 = vld [vmem:[#allocation7 + $0x1a0] sm:$0xff]  ;;  %v225_v50 = vld [vmem:[#allocation7 + $0x198] sm:$0xff] }
  0x45   :  { %264 = vmatprep.subr.mxu1 %v191_v20  ;;  %v224_v51 = vld [vmem:[#allocation7 + $0x190] sm:$0xff]  ;;  %v223_v52 = vld [vmem:[#allocation7 + $0x188] sm:$0xff]  ;;  %v222_v53 = vld [vmem:[#allocation7 + $0x180] sm:$0xff] }
  0x46   :  { %265 = vmatpush1.msra.mxu1 %v190_v21  ;;  %v221_v54 = vld [vmem:[#allocation7 + $0x178] sm:$0xff]  ;;  %v220_v55 = vld [vmem:[#allocation7 + $0x170] sm:$0xff]  ;;  %v219_v56 = vld [vmem:[#allocation7 + $0x168] sm:$0xff] }
  0x47   :  { %266 = vmatprep.subr.mxu1 %v189_v22  ;;  %v218_v57 = vld [vmem:[#allocation7 + $0x160] sm:$0xff]  ;;  %v217_v58 = vld [vmem:[#allocation7 + $0x158] sm:$0xff]  ;;  %v216_v59 = vld [vmem:[#allocation7 + $0x150] sm:$0xff] }
  0x48   :  { %267 = vmatpush1.msra.mxu1 %v188_v23  ;;  %v215_v60 = vld [vmem:[#allocation7 + $0x148] sm:$0xff]  ;;  %v214_v61 = vld [vmem:[#allocation7 + $0x140] sm:$0xff]  ;;  %v213_v62 = vld [vmem:[#allocation7 + $0x138] sm:$0xff] }
  0x49   :  { %268 = vmatprep.subr.mxu1 %v187_v24  ;;  %v212_v63 = vld [vmem:[#allocation7 + $0x130] sm:$0xff]  ;;  %v211_v0 = vld [vmem:[#allocation7 + $0x128] sm:$0xff]  ;;  %v210_v1 = vld [vmem:[#allocation7 + $0x120] sm:$0xff] }
  0x4a   :  { %269 = vmatpush1.msra.mxu1 %v186_v25  ;;  %v209_v2 = vld [vmem:[#allocation7 + $0x118] sm:$0xff]  ;;  %v208_v3 = vld [vmem:[#allocation7 + $0x110] sm:$0xff]  ;;  %v207_v4 = vld [vmem:[#allocation7 + $0x108] sm:$0xff] }
  0x4b   :  { %270 = vmatprep.subr.mxu1 %v185_v26  ;;  %v206_v5 = vld [vmem:[#allocation7 + $0x100] sm:$0xff]  ;;  %v354_v6 = vld [vmem:[#allocation8 + $0xf8] sm:$0xff]  ;;  %v353_v8 = vld [vmem:[#allocation8 + $0xf0] sm:$0xff] }
  0x4c   :  { %271 = vmatpush1.msra.mxu1 %v184_v27  ;;  %v338_v7 = vld [vmem:[#allocation8 + $0x78] sm:$0xff]  ;;  %460 = vmatprep.subr.mxu0 %v354_v6  ;;  %v337_v9 = vld [vmem:[#allocation8 + $0x70] sm:$0xff]  ;;  %v352_v10 = vld [vmem:[#allocation8 + $0xe8] sm:$0xff] }
  0x4d   :  { %272 = vmatprep.subr.mxu1 %v183_v28  ;;  %461 = vmatpush3.msra.mxu0 %v338_v7  ;;  %v336_v11 = vld [vmem:[#allocation8 + $0x68] sm:$0xff]  ;;  %v351_v12 = vld [vmem:[#allocation8 + $0xe0] sm:$0xff]  ;;  %v350_v14 = vld [vmem:[#allocation8 + $0xd8] sm:$0xff] }
  0x4e   :  { %273 = vmatpush1.msra.mxu1 %v182_v29  ;;  %462 = vmatprep.subr.mxu0 %v353_v8  ;;  %v335_v13 = vld [vmem:[#allocation8 + $0x60] sm:$0xff]  ;;  %v334_v15 = vld [vmem:[#allocation8 + $0x58] sm:$0xff]  ;;  %v349_v16 = vld [vmem:[#allocation8 + $0xd0] sm:$0xff] }
  0x4f   :  { %274 = vmatprep.subr.mxu1 %v181_v30  ;;  %463 = vmatpush3.msra.mxu0 %v337_v9  ;;  %v333_v17 = vld [vmem:[#allocation8 + $0x50] sm:$0xff]  ;;  %v348_v18 = vld [vmem:[#allocation8 + $0xc8] sm:$0xff]  ;;  %v347_v20 = vld [vmem:[#allocation8 + $0xc0] sm:$0xff]  ;;  %v87_v30 = vlaneseq }
  0x50   :  { %275 = vmatpush1.msra.mxu1 %v180_v31  ;;  %464 = vmatprep.subr.mxu0 %v352_v10  ;;  %v332_v19 = vld [vmem:[#allocation8 + $0x48] sm:$0xff]  ;;  %v331_v21 = vld [vmem:[#allocation8 + $0x40] sm:$0xff]  ;;  %v346_v22 = vld [vmem:[#allocation8 + $0xb8] sm:$0xff] }
  0x51   :  { %276 = vmatprep.subr.mxu1 %v179_v32  ;;  %465 = vmatpush3.msra.mxu0 %v336_v11  ;;  %v330_v23 = vld [vmem:[#allocation8 + $0x38] sm:$0xff]  ;;  %v345_v24 = vld [vmem:[#allocation8 + $0xb0] sm:$0xff]  ;;  %v344_v26 = vld [vmem:[#allocation8 + $0xa8] sm:$0xff]  ;;  %v88_v31 = vshrl.u32 %v87_v30, 7 }
  0x52   :  { %277 = vmatpush1.msra.mxu1 %v178_v33  ;;  %466 = vmatprep.subr.mxu0 %v351_v12  ;;  %v329_v25 = vld [vmem:[#allocation8 + $0x30] sm:$0xff]  ;;  %v328_v27 = vld [vmem:[#allocation8 + $0x28] sm:$0xff]  ;;  %v343_v28 = vld [vmem:[#allocation8 + $0xa0] sm:$0xff] }
  0x53   :  { %278 = vmatprep.subr.mxu1 %v177_v34  ;;  %467 = vmatpush3.msra.mxu0 %v335_v13  ;;  %v327_v29 = vld [vmem:[#allocation8 + $0x20] sm:$0xff]  ;;  %v89_v32 = vsub.s32 0, %v88_v31  ;;  %v85_v33 = vld [vmem:[%s691_s2] sm:$0x3]  ;;  %v93_v34 = vsub.s32 1, %v88_v31 }
  0x54   :  { %279 = vmatpush1.msra.mxu1 %v176_v35  ;;  %468 = vmatprep.subr.mxu0 %v350_v14 }
  0x55   :  { %280 = vmatprep.subr.mxu1 %v175_v36  ;;  %469 = vmatpush3.msra.mxu0 %v334_v15  ;;  %v90_v35 = vrot.slane %v85_v33, %v89_v32  ;;  %v94_v36 = vrot.slane %v85_v33, %v93_v34 }
  0x56   :  { %281 = vmatpush1.msra.mxu1 %v174_v37  ;;  %470 = vmatprep.subr.mxu0 %v349_v16 }
  0x57   :  { %282 = vmatprep.subr.mxu1 %v237_v38  ;;  %471 = vmatpush3.msra.mxu0 %v333_v17 }
  0x58   :  { %283 = vmatpush2.msra.mxu1 %v236_v39  ;;  %472 = vmatprep.subr.mxu0 %v348_v18 }
  0x59   :  { %284 = vmatprep.subr.mxu1 %v235_v40  ;;  %473 = vmatpush3.msra.mxu0 %v332_v19 }
  0x5a   :  { %285 = vmatpush2.msra.mxu1 %v234_v41  ;;  %474 = vmatprep.subr.mxu0 %v347_v20 }
  0x5b   :  { %286 = vmatprep.subr.mxu1 %v233_v42  ;;  %475 = vmatpush3.msra.mxu0 %v331_v21 }
  0x5c   :  { %287 = vmatpush2.msra.mxu1 %v232_v43  ;;  %476 = vmatprep.subr.mxu0 %v346_v22  ;;  %v342_v43 = vld [vmem:[#allocation8 + $0x98] sm:$0xff] }
  0x5d   :  { %288 = vmatprep.subr.mxu1 %v231_v44  ;;  %477 = vmatpush3.msra.mxu0 %v330_v23  ;;  %v326_v44 = vld [vmem:[#allocation8 + $0x18] sm:$0xff] }
  0x5e   :  { %289 = vmatpush2.msra.mxu1 %v230_v45  ;;  %478 = vmatprep.subr.mxu0 %v345_v24  ;;  %v341_v45 = vld [vmem:[#allocation8 + $0x90] sm:$0xff] }
  0x5f   :  { %290 = vmatprep.subr.mxu1 %v229_v46  ;;  %479 = vmatpush3.msra.mxu0 %v329_v25  ;;  %v325_v46 = vld [vmem:[#allocation8 + $0x10] sm:$0xff] }
  0x60   :  { %291 = vmatpush2.msra.mxu1 %v228_v47  ;;  %480 = vmatprep.subr.mxu0 %v344_v26  ;;  %v340_v47 = vld [vmem:[#allocation8 + $0x88] sm:$0xff] }
  0x61   :  { %292 = vmatprep.subr.mxu1 %v227_v48  ;;  %481 = vmatpush3.msra.mxu0 %v328_v27  ;;  %v324_v48 = vld [vmem:[#allocation8 + $0x8] sm:$0xff] }
  0x62   :  { %293 = vmatpush2.msra.mxu1 %v226_v49  ;;  %482 = vmatprep.subr.mxu0 %v343_v28  ;;  %v339_v49 = vld [vmem:[#allocation8 + $0x80] sm:$0xff] }
  0x63   :  { %294 = vmatprep.subr.mxu1 %v225_v50  ;;  %483 = vmatpush3.msra.mxu0 %v327_v29  ;;  %v323_v50 = vld [vmem:[#allocation8] sm:$0xff] }
  0x64   :  { %295 = vmatpush2.msra.mxu1 %v224_v51  ;;  %484 = vmatprep.subr.mxu0 %v342_v43  ;;  %v238_v51 = vld [vmem:[%s693_s4] sm:$0x3]  ;;  %s624_s4 = smov [#allocation10]  }
  0x65   :  { %296 = vmatprep.subr.mxu1 %v223_v52  ;;  %485 = vmatpush3.msra.mxu0 %v326_v44  ;;  %v243_v52 = vrot.slane %v238_v51, %v89_v32  ;;  %s447_s26 = sshll.u32 %s624_s4, 4  ;;  %s448_s26 = int_to_ptr.vmem [resolvable:$true] %s447_s26 }
  0x66   :  { %297 = vmatpush2.msra.mxu1 %v222_v53  ;;  %486 = vmatprep.subr.mxu0 %v341_v45  ;;  %v247_v53 = vrot.slane %v238_v51, %v93_v34  ;;  %s587_s27 = scalar_lea.vmem %s448_s26, 128  ;;  %p592_p7 = scmp.lt.s32.totalorder %s448_s26, %s448_s26 }
  0x67   :  { %298 = vmatprep.subr.mxu1 %v221_v54  ;;  %487 = vmatpush3.msra.mxu0 %v325_v46  ;;  %p588_p6 = scmp.ne.s32.totalorder %s448_s26, %s587_s27  ;;  %p593_p8 = scmp.lt.s32.totalorder %s587_s27, %s587_s27 }
  0x68   :  { %299 = vmatpush2.msra.mxu1 %v220_v55  ;;  %488 = vmatprep.subr.mxu0 %v340_v47 }
  0x69   :  { %300 = vmatprep.subr.mxu1 %v219_v56  ;;  %489 = vmatpush3.msra.mxu0 %v324_v48  ;;  %p594_p9 = por %p593_p8, %p592_p7 }
  0x6a   :  { %301 = vmatpush2.msra.mxu1 %v218_v57  ;;  %490 = vmatprep.subr.mxu0 %v339_v49 }
  0x6b   :  { %302 = vmatprep.subr.mxu1 %v217_v58  ;;  %491 = vmatpush3.msra.mxu0 %v323_v50  ;;  %p595_p10 = pnand %p594_p9, %p588_p6 }
  0x6c   :  { %303 = vmatpush2.msra.mxu1 %v216_v59 }
  0x6d   :  { %304 = vmatprep.subr.mxu1 %v215_v60 }
  0x6e   :  { %305 = vmatpush2.msra.mxu1 %v214_v61  ;;  %v459_v61 = vld [vmem:[%s695_s6] ss:$0 sm:$0xff] }
  0x6f   :  { %306 = vmatprep.subr.mxu1 %v213_v62 }
  0x70   :  { %307 = vmatpush2.msra.mxu1 %v212_v63 }
  0x71   :  { %308 = vmatprep.subr.mxu1 %v211_v0 }
  0x72   :  { %309 = vmatpush2.msra.mxu1 %v210_v1 }
  0x73   :  { %310 = vmatprep.subr.mxu1 %v209_v2  ;;  %v437_v2 = vand.u32 127, %v87_v30 }
  0x74   :  { %311 = vmatpush2.msra.mxu1 %v208_v3 }
  0x75   :  { %312 = vmatprep.subr.mxu1 %v207_v4  ;;  %vm438_vm1 = vcmp.lt.s32.totalorder %v437_v2, 64 }
  0x76   :  { %313 = vmatpush2.msra.mxu1 %v206_v5 }
  0xf9   :  { %v167_v37 = vpop.f32.mrf.mxu0 }
  0xfa   :  { %v168_v38 = vadd.f32 %v167_v37, %v90_v35 }
  0xfb   :  { %v169_v39 = vpop.f32.mrf.mxu0 }
  0xfc   :  { %v170_v40 = vadd.f32 %v169_v39, %v94_v36  ;;  %v172_v42 = vmax.f32 %v168_v38, 0.0 }
  0xfe   :  { %v173_v41 = vmax.f32 %v170_v40, 0.0 }
 0x100   :  { %314 = vmatprep.mubr.f32.mxu1 %v173_v41 }
 0x101   :  { %315 = vmatmul.mubr.f32.vlgmr.msra.gmra.mxu1 %v172_v42 }
 0x1c1   :  { %v316_v54 = vpop.f32.mrf.mxu1 }
 0x1c2   :  { %v317_v55 = vadd.f32 %v316_v54, %v243_v52 }
 0x1c3   :  { %v318_v56 = vpop.f32.mrf.mxu1 }
 0x1c4   :  { %v319_v57 = vadd.f32 %v318_v56, %v247_v53  ;;  %v321_v59 = vmax.f32 %v317_v55, 0.0 }
 0x1c6   :  { %v322_v58 = vmax.f32 %v319_v57, 0.0 }
 0x1c8   :  { %426 = vmatprep.mubr.f32.mxu0 %v322_v58 }
 0x1c9   :  { %427 = vmatmul.mubr.f32.vlgmr.msra.gmra.mxu0 %v321_v59 }
 0x289   :  { %v492_v60 = vpop.f32.mrf.mxu0 }
 0x28b   :  { %v493_v62 = vpop.f32.mrf.mxu0 }
 0x28c   :  { %v494_v63 = vadd.f32 %v493_v62, %v492_v60 }
 0x28e   :  { %v429_v0 = vadd.f32 %v494_v63, %v459_v61 }
 0x290   :  { %505 = vtanh.f32 %v429_v0 }
 0x29d   :  { %v506_v1 = vpop.eup %505 }
 0x29e   :  { %v433_v3 = vadd.f32 1.0, %v506_v1 }
 0x2a0   :  { %v434_v4 = vmul.f32 3.5, %v433_v3 }
 0x2a2   :  { %v435_v5 = vadd.f32 -5.0, %v434_v4 }
 0x2a4   :  { %v439_v6 = vsel %vm438_vm1, %v429_v0, %v435_v5 }
 0x2a5   :  { %440 = vst [vmem:[#allocation10] sm:$0xff] %v439_v6 }
 0x2a6   :  { %598 = shalt.err (!%p595_p10)
}
 0x2a7   :  { %450 = dma.vmem_to_hbm [thread:$0]  %s448_s26, 128, %s696_s7, [#allocation4]  }
 0x2a8   :  { %613 = dma.done.wait [#allocation4], 128  }
 0x2a9   :  { %614 = vsyncadd [#allocation4], 4294967168 }
 0x2aa   :  { %454 = vsyncpa [#allocation3], 1 }
 0x2ab   :  { %455 = vsyncpa [#allocation6], 1 }
 0x2ac   :  { %456 = vsyncpa [#allocation9], 1 }
 0x2ad   :  { %457 = vsyncpa [#allocation4], 1 }

</bundles_post_ra>
